<compile_context>
chip_gen: v7x
topology: tpu7x:2x2x1
jax: 0.10.0
libtpu: 0.0.40
codegen_flags: <defaults>
</compile_context>

<pallas_src>
import jax
import jax.numpy as jnp
from jax.experimental import pallas as pl
from jax.experimental.pallas import tpu as pltpu

_LANE = 128
_SUBLANE = 8
_BLOCK_BYTE_BUDGET = 2 * 1024 * 1024  # ~2 MiB/block: near-roofline on v5e/v6e/v7x


def _identity_kernel(x_ref, o_ref):
    # Pure pass-through on the current lane-dense tile.
    o_ref[...] = x_ref[...]


def _identity_lane_dense(x2d: jax.Array) -> jax.Array:
    """Identity over a lane-dense [rows, cols] slab (cols % 128 == 0)."""
    rows, cols = x2d.shape
    itemsize = jnp.dtype(x2d.dtype).itemsize

    block_rows = _BLOCK_BYTE_BUDGET // (cols * itemsize)
    block_rows = max(_SUBLANE, (block_rows // _SUBLANE) * _SUBLANE)
    if block_rows >= rows:
        block_rows = rows  # full extent is always a legal block shape

    num_blocks = pl.cdiv(rows, block_rows)

    return pl.pallas_call(
        _identity_kernel,
        out_shape=jax.ShapeDtypeStruct((rows, cols), x2d.dtype),
        grid=(num_blocks,),
        in_specs=[pl.BlockSpec((block_rows, cols), lambda i: (i, 0))],
        out_specs=pl.BlockSpec((block_rows, cols), lambda i: (i, 0)),
        input_output_aliases={0: 0},
        compiler_params=pltpu.CompilerParams(
            dimension_semantics=("parallel",),
        ),
    )(x2d)


def identity_encoding(x: jax.Array) -> jax.Array:
    """Pallas implementation of IdentityEncoding.forward.

    x: [batch_size, seq_len, embedding_dim] -> identical array.
    """
    orig_shape = x.shape
    total = 1
    for d in orig_shape:
        total *= int(d)

    # Pick a lane-dense flattening: the widest cols in [128, 1024] (multiple of
    # 128) that divides the element count.
    cols = 0
    for k in range(8, 0, -1):  # 1024, 896, ..., 128
        c = _LANE * k
        if total % c == 0:
            cols = c
            break

    if cols:
        y2d = _identity_lane_dense(x.reshape(total // cols, cols))
        return y2d.reshape(orig_shape)

    # Fallback: element count not a multiple of 128.  Tile over the batch dim
    # with a (1, seq, embed) block; full-extent trailing dims satisfy the
    # (8,128) rule and keep VMEM use bounded (masked stores are unavoidable
    # here since the last dim is not lane-aligned).
    # TODO(synk): pad-and-slice lane-dense path for huge non-128-divisible inputs.
    if len(orig_shape) == 3 and orig_shape[0] > 1:
        B, S, E = orig_shape
        return pl.pallas_call(
            _identity_kernel,
            out_shape=jax.ShapeDtypeStruct(orig_shape, x.dtype),
            grid=(B,),
            in_specs=[pl.BlockSpec((1, S, E), lambda b: (b, 0, 0))],
            out_specs=pl.BlockSpec((1, S, E), lambda b: (b, 0, 0)),
            input_output_aliases={0: 0},
            compiler_params=pltpu.CompilerParams(
                dimension_semantics=("parallel",),
            ),
        )(x)

    # Last resort: single whole-array block (block == full dims is legal).
    return pl.pallas_call(
        _identity_kernel,
        out_shape=jax.ShapeDtypeStruct(orig_shape, x.dtype),
        input_output_aliases={0: 0},
    )(x)


if __name__ == "__main__":
    # Small shapes consistent with the module's forward: [batch, seq, embed].
    key = jax.random.PRNGKey(0)
    B, S, E = 2, 8, 32
    x = jax.random.normal(key, (B, S, E), dtype=jnp.float32)

    y = identity_encoding(x)
    y = jax.block_until_ready(y)

    assert y.shape == x.shape and y.dtype == x.dtype
    assert jnp.array_equal(y, x), "identity kernel output mismatch"

    # Also exercise the non-128-divisible fallback path (3*5*7 = 105 elems).
    x_odd = jax.random.normal(key, (3, 5, 7), dtype=jnp.float32)
    y_odd = jax.block_until_ready(identity_encoding(x_odd))
    assert jnp.array_equal(y_odd, x_odd), "fallback identity mismatch"

    print("KERNEL_OK")
</pallas_src>

<mosaic_0001>
module attributes {stable_mosaic.version = 11 : i64} {
  func.func @_identity_kernel(%arg0: i32, %arg1: memref<1x512xf32, #tpu.memory_space<vmem>>, %arg2: memref<1x512xf32, #tpu.memory_space<vmem>>) attributes {dimension_semantics = [#tpu.dimension_semantics<parallel>], iteration_bounds = array<i64: 1>, scalar_prefetch = 0 : i64, scratch_operands = 0 : i64, tpu.core_type = #tpu.core_type<tc>, window_params = [{transform_indices = @transform_0, window_bounds = array<i64: 1, 512>}, {transform_indices = @transform_1, window_bounds = array<i64: 1, 512>}]} {
    %c0 = arith.constant 0 : index
    %c0_0 = arith.constant 0 : index
    %0 = vector.load %arg1[%c0, %c0_0] : memref<1x512xf32, #tpu.memory_space<vmem>>, vector<1x512xf32>
    %c0_1 = arith.constant 0 : index
    %c0_2 = arith.constant 0 : index
    %1 = vector.load %arg2[%c0_1, %c0_2] : memref<1x512xf32, #tpu.memory_space<vmem>>, vector<1x512xf32>
    tpu.vector_store %arg2[%c0_1, %c0_2], %0 {strides = array<i32>} : memref<1x512xf32, #tpu.memory_space<vmem>>, vector<1x512xf32>,
    return
  }
  func.func @transform_0(%arg0: i32) -> (i32, i32) {
    %c0_i32 = arith.constant 0 : i32
    %c0_i32_0 = arith.constant 0 : i32
    return %arg0, %c0_i32 : i32, i32
  }
  func.func @transform_1(%arg0: i32) -> (i32, i32) {
    %c0_i32 = arith.constant 0 : i32
    %c0_i32_0 = arith.constant 0 : i32
    return %arg0, %c0_i32 : i32, i32
  }
}

</mosaic_0001>

<bundles_post_ra>
// kernel: tpu_custom_call.1
= control target key start
LH: loop header
LB: loop body
LE: loop exit
PB: predicated region body
PF: predicated region fallthrough
CT: control target
= control target key end

     0   :  { %6 = vsyncpa [#allocation3], 0  ;;  %s128_s0 = inlined_call_operand.hbm [shape: f32[1,512], index: 0, kind: input, shape index: {}, may-alias: {0,1}]   ;;  %s129_s1 = inlined_call_operand.hbm [shape: f32[1,512], index: 1, kind: output, shape index: {}, may-alias: {0,1}]  }
   0x1   :  { %7 = vsyncpa [#allocation4], 0  ;;  %s92_s6 = smov [#allocation2]   ;;  %s44_s10 = scalar_lea.hbm %s128_s0, 64 }
   0x2   :  { %s14_s7 = sshll.u32 %s92_s6, 4  ;;  %p45_p0 = scmp.ne.s32.totalorder %s128_s0, %s44_s10  ;;  %s15_s7 = int_to_ptr.vmem [resolvable:$true] %s14_s7 }
   0x3   :  { %p48_p1 = scmp.lt.u32.totalorder %s44_s10, %s128_s0 }
   0x5   :  { %p50_p2 = pnand %p48_p1, %p45_p0 }
   0x7   :  { %53 = shalt.err (!%p50_p2)
}
   0x8   :  { %s54_s15 = scalar_lea.vmem %s15_s7, 64  ;;  %p59_p4 = scmp.lt.s32.totalorder %s15_s7, %s15_s7 }
   0x9   :  { %p55_p3 = scmp.ne.s32.totalorder %s15_s7, %s54_s15  ;;  %p60_p5 = scmp.lt.s32.totalorder %s54_s15, %s54_s15 }
   0xb   :  { %p61_p6 = por %p60_p5, %p59_p4 }
   0xd   :  { %p62_p7 = pnand %p61_p6, %p55_p3 }
   0xf   :  { %65 = shalt.err (!%p62_p7)
}
  0x10   :  { %17 = dma.hbm_to_vmem [thread:$0]  %s128_s0, 64, %s15_s7, [#allocation3]  }
  0x11   :  { %88 = dma.done.wait [#allocation3], 64  }
  0x12   :  { %89 = vsyncadd [#allocation3], 4294967232  ;;  %v22_v0 = vlaneseq  ;;  %s93_s18 = smov [#allocation5]   ;;  %v21_v1 = vld [vmem:[#allocation2] sm:$0xf] }
  0x13   :  { %s33_s19 = sshll.u32 %s93_s18, 4  ;;  %s34_s19 = int_to_ptr.vmem [resolvable:$true] %s33_s19 }
  0x14   :  { %vm24_vm0 = vcmp.lt.s32.totalorder %v22_v0, 512  ;;  %s66_s20 = scalar_lea.vmem %s34_s19, 64  ;;  %p71_p9 = scmp.lt.s32.totalorder %s34_s19, %s34_s19 }
  0x15   :  { %26 = vst.msk [vmem:[#allocation5] sm:$0xf] %vm24_vm0, %v21_v1  ;;  %p67_p8 = scmp.ne.s32.totalorder %s34_s19, %s66_s20  ;;  %p72_p10 = scmp.lt.s32.totalorder %s66_s20, %s66_s20 }
  0x17   :  { %p73_p11 = por %p72_p10, %p71_p9 }
  0x19   :  { %p74_p12 = pnand %p73_p11, %p67_p8 }
  0x1b   :  { %77 = shalt.err (!%p74_p12)
}
  0x1c   :  { %s78_s0 = scalar_lea.hbm %s129_s1, 64 }
  0x1d   :  { %p79_p13 = scmp.ne.s32.totalorder %s129_s1, %s78_s0  ;;  %p82_p0 = scmp.lt.u32.totalorder %s78_s0, %s129_s1 }
  0x1f   :  { %p84_p1 = pnand %p82_p0, %p79_p13 }
  0x21   :  { %87 = shalt.err (!%p84_p1)
}
  0x22   :  { %36 = dma.vmem_to_hbm [thread:$0]  %s34_s19, 64, %s129_s1, [#allocation4]  }
  0x23   :  { %90 = dma.done.wait [#allocation4], 64  }
  0x24   :  { %91 = vsyncadd [#allocation4], 4294967232 }
  0x25   :  { %40 = vsyncpa [#allocation3], 1 }
  0x26   :  { %41 = vsyncpa [#allocation4], 1 }

</bundles_post_ra>
